<compile_context>
chip_gen: v6e
topology: v6e:2x2x1
jax: 0.10.0
libtpu: 0.0.40
codegen_flags: <defaults>
</compile_context>

<pallas_src>
import math
import functools

import numpy as np
import jax
import jax.numpy as jnp
from jax import lax
from jax.experimental import pallas as pl
from jax.experimental.pallas import tpu as pltpu


# ---------------------------------------------------------------------------
# Adjacency preprocessing (mirror of sym_norm_Adj from the PyTorch code)
# ---------------------------------------------------------------------------
def sym_norm_adj_np(W: np.ndarray) -> np.ndarray:
    assert W.shape[0] == W.shape[1]
    N = W.shape[0]
    W = W.astype(np.float32) + 0.4 * np.identity(N, dtype=np.float32)
    D = np.zeros((N, N), dtype=np.float32)
    D[W != 0.0] = 1.0
    D = np.diag(np.sum(D, axis=1))
    sym = np.sqrt(D) @ W
    sym = sym @ np.sqrt(D)
    return sym.astype(np.float32)


def _round_up(x: int, m: int) -> int:
    return ((x + m - 1) // m) * m


# ---------------------------------------------------------------------------
# Pallas kernel: TB batch elements per grid step, everything in VMEM.
# ---------------------------------------------------------------------------
def avwgcn2_kernel(x_ref, xt_ref, at_ref, rsum_ref, coef_ref, thetab_t_ref,
                   wlin_ref, blin_ref, out_ref, *, matmul_dtype):
    tb, n, c_in = x_ref.shape
    f32 = jnp.float32

    x3 = x_ref[...].astype(f32)                      # (TB, N, C) batch-row-major
    xt = xt_ref[0]                                   # (N, TB*C)  node-major copy

    # y[n, j*C + c] = sum_m (A^T/sqrt(C))[n, m] * x[j, m, c]  -- ONE wide MXU matmul
    y = jnp.dot(at_ref[...], xt, preferred_element_type=f32)           # (N, TB*C)
    prod = xt.astype(f32) * y                                          # (N, TB*C)
    # dy_diag[n, j] = sum_c prod[n, j*C+c] : grouped lane reduce as an MXU matmul
    dd_nm = jnp.dot(prod, rsum_ref[...], preferred_element_type=f32)   # (N, TB)
    dd = dd_nm.T                                                       # (TB, N)

    # dy_out (beta and Theta^T folded on the host), on flattened rows M = TB*N
    z_flat = (dd[:, :, None] * x3).reshape(tb * n, c_in).astype(matmul_dtype)
    dy_flat = jnp.dot(z_flat, thetab_t_ref[...],
                      preferred_element_type=f32)                      # (TB*N, C)

    # coef = alpha*diag(A) + gamma  (per node, broadcast over batch & channels)
    gcn3 = jnp.maximum(coef_ref[...] * x3 + dy_flat.reshape(tb, n, c_in), 0.0)
    gcn_flat = gcn3.reshape(tb * n, c_in).astype(matmul_dtype)

    # Lane-dense transposed output: (C_out, TB*N); wrapper undoes the transpose.
    out_t = lax.dot_general(wlin_ref[...], gcn_flat,
                            dimension_numbers=(((1,), (1,)), ((), ())),
                            preferred_element_type=f32)
    out_ref[0] = (out_t + blin_ref[...]).astype(out_ref.dtype)


# ---------------------------------------------------------------------------
# Wrapper
# ---------------------------------------------------------------------------
def avwgcn2_forward(x, A, theta_w, lin_w, lin_b, alpha, beta, gamma, *,
                    batch_tile=None, matmul_dtype=jnp.float32,
                    tile_target_bytes=2 << 20, single_buffer_weights=True):
    """x: (B, N, C_in); A = softmax(sym_norm_adj), (N, N). Returns (out, att_his)."""
    B, N, C_in = x.shape
    C_out = lin_w.shape[0]

    # --- host-side prep: pad N to a sublane multiple, fold constants ---------
    N_pad = _round_up(max(N, 8), 8)
    A = jnp.asarray(A, jnp.float32)
    xp = x
    if N_pad != N:
        xp = jnp.pad(x, ((0, 0), (0, N_pad - N), (0, 0)))
        A = jnp.pad(A, ((0, N_pad - N), (0, N_pad - N)))

    at_scaled = A.T * (1.0 / math.sqrt(C_in))                       # (Np, Np)
    coef = (alpha * jnp.diagonal(A) + gamma).reshape(N_pad, 1)      # (Np, 1)
    thetab_t = beta * jnp.asarray(theta_w, jnp.float32).T           # (C_in, C_in)
    wlin = jnp.asarray(lin_w, jnp.float32)                          # (C_out, C_in)
    blin = jnp.asarray(lin_b, jnp.float32).reshape(C_out, 1)        # (C_out, 1)

    if jnp.dtype(matmul_dtype) != jnp.dtype(jnp.float32):
        at_scaled = at_scaled.astype(matmul_dtype)
        thetab_t = thetab_t.astype(matmul_dtype)
        wlin = wlin.astype(matmul_dtype)

    x_item = jnp.dtype(xp.dtype).itemsize
    mm_item = jnp.dtype(matmul_dtype).itemsize
    out_dtype = x.dtype
    out_item = jnp.dtype(out_dtype).itemsize

    # --- batch tile: byte-targeted (lane-padding aware), >=2 grid steps ------
    per_batch_bytes = (N_pad * _round_up(C_in, 128) * x_item        # x block rowset
                       + N_pad * C_in * mm_item)                    # x_t share
    if batch_tile is None:
        cap = max(1, int(tile_target_bytes) // max(per_batch_bytes, 1))
        if B >= 2:
            cap = min(cap, B // 2)      # keep >=2 grid steps for v7x megacore split
        cap = max(1, min(cap, B))
        tb = 1
        for d in range(1, cap + 1):
            if B % d == 0:
                tb = d
    else:
        tb = int(batch_tile)
        if tb < 1 or B % tb != 0:
            raise ValueError(f"batch_tile={tb} must divide B={B}")
    G = B // tb

    # --- node-major duplicate of x for the batched A^T matmul ----------------
    x_t = xp.reshape(G, tb, N_pad, C_in)
    x_t = jnp.transpose(x_t, (0, 2, 1, 3)).reshape(G, N_pad, tb * C_in)
    x_t = x_t.astype(matmul_dtype)

    # Group-sum matrix R[j*C + c, j] = 1: grouped channel reduce as one MXU matmul.
    r_sum = jnp.asarray(np.kron(np.eye(tb, dtype=np.float32),
                                np.ones((C_in, 1), dtype=np.float32)))

    # --- VMEM / cost bookkeeping ---------------------------------------------
    lane = lambda c: _round_up(max(int(c), 1), 128)
    sub = lambda r: _round_up(max(int(r), 1), 8)
    wbuf = 1 if single_buffer_weights else 2
    vmem_est = (
        2 * tb * N_pad * lane(C_in) * x_item                  # x blocks (dbl buffered)
        + 2 * N_pad * lane(tb * C_in) * mm_item               # x_t blocks
        + 2 * sub(C_out) * lane(tb * N_pad) * out_item        # out blocks
        + wbuf * (N_pad * lane(N_pad) * mm_item               # A^T
                  + sub(tb * C_in) * lane(tb) * 4             # R
                  + N_pad * 128 * 4                           # coef
                  + sub(C_in) * lane(C_in) * mm_item          # Theta^T
                  + sub(C_out) * lane(C_in) * mm_item         # W_lin
                  + sub(C_out) * 128 * 4)                     # b_lin
        + 8 * N_pad * lane(tb * C_in) * 4                     # in-kernel intermediates
    )
    try:
        vmem_cap = int(pltpu.get_tpu_info().vmem_capacity_bytes)
    except Exception:
        vmem_cap = 64 << 20                                   # conservative (v7x per-core)
    vmem_limit = int(min(max(2 * vmem_est, 8 << 20), int(0.75 * vmem_cap)))

    flops = B * N_pad * (2 * N_pad * C_in + 2 * tb * C_in
                         + 2 * C_in * C_in + 2 * C_in * C_out + 8 * C_in)
    bytes_accessed = (B * N_pad * C_in * (x_item + mm_item)
                      + B * N_pad * C_out * out_item
                      + (N_pad * N_pad + C_in * C_in + C_out * C_in) * mm_item
                      + (tb * C_in * tb + N_pad + C_out) * 4)
    cost = pl.CostEstimate(flops=int(flops), transcendentals=0,
                           bytes_accessed=int(bytes_accessed))

    kernel = functools.partial(avwgcn2_kernel, matmul_dtype=matmul_dtype)

    def _call(single_buffer):
        inv = dict(pipeline_mode=pl.Buffered(1)) if single_buffer else {}
        in_specs = [
            pl.BlockSpec((tb, N_pad, C_in), lambda b: (b, 0, 0)),          # x
            pl.BlockSpec((1, N_pad, tb * C_in), lambda b: (b, 0, 0)),      # x node-major
            pl.BlockSpec((N_pad, N_pad), lambda b: (0, 0), **inv),         # A^T / sqrt(C)
            pl.BlockSpec((tb * C_in, tb), lambda b: (0, 0), **inv),        # group-sum R
            pl.BlockSpec((N_pad, 1), lambda b: (0, 0), **inv),             # alpha*diag(A)+gamma
            pl.BlockSpec((C_in, C_in), lambda b: (0, 0), **inv),           # beta * Theta_W^T
            pl.BlockSpec((C_out, C_in), lambda b: (0, 0), **inv),          # W_lin
            pl.BlockSpec((C_out, 1), lambda b: (0, 0), **inv),             # b_lin
        ]
        return pl.pallas_call(
            kernel,
            out_shape=jax.ShapeDtypeStruct((G, C_out, tb * N_pad), out_dtype),
            grid=(G,),
            in_specs=in_specs,
            out_specs=pl.BlockSpec((1, C_out, tb * N_pad), lambda b: (b, 0, 0)),
            compiler_params=pltpu.CompilerParams(
                dimension_semantics=("parallel",),
                vmem_limit_bytes=vmem_limit),
            cost_estimate=cost,
        )(xp, x_t, at_scaled, r_sum, coef, thetab_t, wlin, blin)

    if single_buffer_weights:
        try:
            out_t = jax.block_until_ready(_call(True))
        except Exception:
            # Pallas build without pipeline_mode / Buffered(1) support: fall back.
            out_t = jax.block_until_ready(_call(False))
    else:
        out_t = jax.block_until_ready(_call(False))

    # Undo the lane-dense transposed layout (cheap XLA ops outside the kernel).
    out = out_t.reshape(G, C_out, tb, N_pad)
    out = jnp.transpose(out, (0, 2, 3, 1)).reshape(B, N_pad, C_out)
    if N_pad != N:
        out = out[:, :N, :]

    # Default forward path (att_his=None) returns None, matching PyTorch.
    return out, None


# ---------------------------------------------------------------------------
# Pure-JAX reference (for correctness check)
# ---------------------------------------------------------------------------
def reference_forward(x, A, theta_w, lin_w, lin_b, alpha, beta, gamma):
    B, N, C = x.shape
    score = jnp.einsum('bnc,bmc->bnm', x, x) / math.sqrt(C)
    static_out = jnp.diagonal(A)[None, :, None] * x
    dy_adj = jnp.einsum('bnm,mk->bnk', score, A)
    dy_diag = jnp.diagonal(dy_adj, axis1=1, axis2=2)              # (B, N)
    dy_out = (dy_diag[..., None] * x) @ theta_w.T
    gcn = jnp.maximum(alpha * static_out + beta * dy_out + gamma * x, 0.0)
    return gcn @ lin_w.T + lin_b


if __name__ == "__main__":
    alpha, beta, gamma = 0.4, 0.55, 0.05
    key = jax.random.PRNGKey(0)
    k1, k2 = jax.random.split(key)

    def make_case(case_key, B, N, C_in, C_out):
        k_adj, k_x, k_theta, k_w, k_b = jax.random.split(case_key, 5)
        adj_np = (np.asarray(jax.random.uniform(k_adj, (N, N))) > 0.6).astype(np.float32)
        np.fill_diagonal(adj_np, 0.0)
        sym = sym_norm_adj_np(adj_np)
        A = jax.nn.softmax(jnp.asarray(sym), axis=1)              # as in spatialAttentionGCN
        bound = 1.0 / math.sqrt(C_in)
        theta_w = jax.random.uniform(k_theta, (C_in, C_in), jnp.float32, -bound, bound)
        lin_w = jax.random.uniform(k_w, (C_out, C_in), jnp.float32, -bound, bound)
        lin_b = jax.random.uniform(k_b, (C_out,), jnp.float32, -bound, bound)
        x = jax.random.normal(k_x, (B, N, C_in), jnp.float32)
        return x, A, theta_w, lin_w, lin_b

    # Case 1: N already a sublane multiple; auto tile (tb=4, 2 grid steps),
    # explicit smaller tile, and the bf16 MXU-operand path.
    x, A, theta_w, lin_w, lin_b = make_case(k1, B=8, N=16, C_in=8, C_out=8)
    ref = reference_forward(x, A, theta_w, lin_w, lin_b, alpha, beta, gamma)
    for bt, mmdt, rtol, atol in ((None, jnp.float32, 5e-4, 5e-4),
                                 (2, jnp.float32, 5e-4, 5e-4),
                                 (4, jnp.bfloat16, 1e-1, 1e-1)):
        out, att_his = avwgcn2_forward(x, A, theta_w, lin_w, lin_b,
                                       alpha, beta, gamma,
                                       batch_tile=bt, matmul_dtype=mmdt)
        out = jax.block_until_ready(out)
        np.testing.assert_allclose(np.asarray(out), np.asarray(ref),
                                   rtol=rtol, atol=atol)
        assert att_his is None

    # Case 2: N not a multiple of 8 (exercises node padding) + rectangular linear.
    x2, A2, theta_w2, lin_w2, lin_b2 = make_case(k2, B=4, N=12, C_in=8, C_out=4)
    ref2 = reference_forward(x2, A2, theta_w2, lin_w2, lin_b2, alpha, beta, gamma)
    out2, _ = avwgcn2_forward(x2, A2, theta_w2, lin_w2, lin_b2, alpha, beta, gamma)
    out2 = jax.block_until_ready(out2)
    np.testing.assert_allclose(np.asarray(out2), np.asarray(ref2),
                               rtol=5e-4, atol=5e-4)

    print("KERNEL_OK")
</pallas_src>

<mosaic_0001>
module attributes {stable_mosaic.version = 11 : i64} {
  func.func @avwgcn2_kernel(%arg0: i32, %arg1: memref<4x16x8xf32, #tpu.memory_space<vmem>>, %arg2: memref<1x16x32xf32, #tpu.memory_space<vmem>>, %arg3: memref<16x16xf32, #tpu.memory_space<vmem>>, %arg4: memref<32x4xf32, #tpu.memory_space<vmem>>, %arg5: memref<16x1xf32, #tpu.memory_space<vmem>>, %arg6: memref<8x8xf32, #tpu.memory_space<vmem>>, %arg7: memref<8x8xf32, #tpu.memory_space<vmem>>, %arg8: memref<8x1xf32, #tpu.memory_space<vmem>>, %arg9: memref<1x8x64xf32, #tpu.memory_space<vmem>>) attributes {dimension_semantics = [#tpu.dimension_semantics<parallel>], iteration_bounds = array<i64: 2>, scalar_prefetch = 0 : i64, scratch_operands = 0 : i64, tpu.core_type = #tpu.core_type<tc>, window_params = [{transform_indices = @transform_0, window_bounds = array<i64: 4, 16, 8>}, {transform_indices = @transform_1, window_bounds = array<i64: 1, 16, 32>}, {pipeline_mode = #tpu.pipeline_mode<synchronous>, transform_indices = @transform_2, window_bounds = array<i64: 16, 16>}, {pipeline_mode = #tpu.pipeline_mode<synchronous>, transform_indices = @transform_3, window_bounds = array<i64: 32, 4>}, {pipeline_mode = #tpu.pipeline_mode<synchronous>, transform_indices = @transform_4, window_bounds = array<i64: 16, 1>}, {pipeline_mode = #tpu.pipeline_mode<synchronous>, transform_indices = @transform_5, window_bounds = array<i64: 8, 8>}, {pipeline_mode = #tpu.pipeline_mode<synchronous>, transform_indices = @transform_6, window_bounds = array<i64: 8, 8>}, {pipeline_mode = #tpu.pipeline_mode<synchronous>, transform_indices = @transform_7, window_bounds = array<i64: 8, 1>}, {transform_indices = @transform_8, window_bounds = array<i64: 1, 8, 64>}]} {
    %c0 = arith.constant 0 : index
    %c0_0 = arith.constant 0 : index
    %c0_1 = arith.constant 0 : index
    %0 = vector.load %arg1[%c0, %c0_0, %c0_1] : memref<4x16x8xf32, #tpu.memory_space<vmem>>, vector<4x16x8xf32>
    %c0_2 = arith.constant 0 : index
    %c0_3 = arith.constant 0 : index
    %c0_4 = arith.constant 0 : index
    %1 = vector.load %arg2[%c0_2, %c0_3, %c0_4] : memref<1x16x32xf32, #tpu.memory_space<vmem>>, vector<1x16x32xf32>
    %2 = vector.shape_cast %1 : vector<1x16x32xf32> to vector<16x32xf32>
    %c0_5 = arith.constant 0 : index
    %c0_6 = arith.constant 0 : index
    %3 = vector.load %arg3[%c0_5, %c0_6] : memref<16x16xf32, #tpu.memory_space<vmem>>, vector<16x16xf32>
    %cst = arith.constant dense<0.000000e+00> : vector<16x32xf32>
    %4 = tpu.matmul %3, %2, %cst {dimension_numbers = #tpu.dot_dimension_numbers<[1], [0], [0], [1], [0, 0, 1, 1], [], []>} : vector<16x16xf32>, vector<16x32xf32>, vector<16x32xf32> -> vector<16x32xf32>
    %5 = arith.mulf %2, %4 : vector<16x32xf32>
    %c0_7 = arith.constant 0 : index
    %c0_8 = arith.constant 0 : index
    %6 = vector.load %arg4[%c0_7, %c0_8] : memref<32x4xf32, #tpu.memory_space<vmem>>, vector<32x4xf32>
    %cst_9 = arith.constant dense<0.000000e+00> : vector<16x4xf32>
    %7 = tpu.matmul %5, %6, %cst_9 {dimension_numbers = #tpu.dot_dimension_numbers<[1], [0], [0], [1], [0, 0, 1, 1], [], []>} : vector<16x32xf32>, vector<32x4xf32>, vector<16x4xf32> -> vector<16x4xf32>
    %8 = tpu.transpose %7, [1, 0] : vector<16x4xf32> -> vector<4x16xf32>
    %9 = vector.shape_cast %8 : vector<4x16xf32> to vector<4x16x1xf32>
    %10 = vector.broadcast %9 : vector<4x16x1xf32> to vector<4x16x8xf32>
    %11 = arith.mulf %10, %0 : vector<4x16x8xf32>
    %12 = vector.shape_cast %11 : vector<4x16x8xf32> to vector<64x8xf32>
    %c0_10 = arith.constant 0 : index
    %c0_11 = arith.constant 0 : index
    %13 = vector.load %arg6[%c0_10, %c0_11] : memref<8x8xf32, #tpu.memory_space<vmem>>, vector<8x8xf32>
    %cst_12 = arith.constant dense<0.000000e+00> : vector<64x8xf32>
    %14 = tpu.matmul %12, %13, %cst_12 {dimension_numbers = #tpu.dot_dimension_numbers<[1], [0], [0], [1], [0, 0, 1, 1], [], []>} : vector<64x8xf32>, vector<8x8xf32>, vector<64x8xf32> -> vector<64x8xf32>
    %c0_13 = arith.constant 0 : index
    %c0_14 = arith.constant 0 : index
    %15 = vector.load %arg5[%c0_13, %c0_14] : memref<16x1xf32, #tpu.memory_space<vmem>>, vector<16x1xf32>
    %16 = vector.shape_cast %15 : vector<16x1xf32> to vector<1x16x1xf32>
    %17 = vector.broadcast %16 : vector<1x16x1xf32> to vector<4x16x8xf32>
    %18 = arith.mulf %17, %0 : vector<4x16x8xf32>
    %19 = vector.shape_cast %14 : vector<64x8xf32> to vector<4x16x8xf32>
    %20 = arith.addf %18, %19 : vector<4x16x8xf32>
    %cst_15 = arith.constant 0.000000e+00 : f32
    %21 = vector.broadcast %cst_15 : f32 to vector<4x16x8xf32>
    %22 = arith.maximumf %20, %21 : vector<4x16x8xf32>
    %23 = vector.shape_cast %22 : vector<4x16x8xf32> to vector<64x8xf32>
    %c0_16 = arith.constant 0 : index
    %c0_17 = arith.constant 0 : index
    %24 = vector.load %arg7[%c0_16, %c0_17] : memref<8x8xf32, #tpu.memory_space<vmem>>, vector<8x8xf32>
    %cst_18 = arith.constant dense<0.000000e+00> : vector<8x64xf32>
    %25 = tpu.matmul %24, %23, %cst_18 {dimension_numbers = #tpu.dot_dimension_numbers<[1], [1], [0], [0], [0, 0, 1, 0], [], []>} : vector<8x8xf32>, vector<64x8xf32>, vector<8x64xf32> -> vector<8x64xf32>
    %c0_19 = arith.constant 0 : index
    %c0_20 = arith.constant 0 : index
    %26 = vector.load %arg8[%c0_19, %c0_20] : memref<8x1xf32, #tpu.memory_space<vmem>>, vector<8x1xf32>
    %27 = vector.broadcast %26 : vector<8x1xf32> to vector<8x64xf32>
    %28 = arith.addf %25, %27 : vector<8x64xf32>
    %c0_21 = arith.constant 0 : index
    %c0_22 = arith.constant 0 : index
    %c0_23 = arith.constant 0 : index
    %29 = vector.load %arg9[%c0_21, %c0_22, %c0_23] : memref<1x8x64xf32, #tpu.memory_space<vmem>>, vector<1x8x64xf32>
    %30 = vector.shape_cast %29 : vector<1x8x64xf32> to vector<8x64xf32>
    %31 = vector.shape_cast %28 : vector<8x64xf32> to vector<1x8x64xf32>
    tpu.vector_store %arg9[%c0_21, %c0_22, %c0_23], %31 {strides = array<i32>} : memref<1x8x64xf32, #tpu.memory_space<vmem>>, vector<1x8x64xf32>,
    return
  }
  func.func @transform_0(%arg0: i32) -> (i32, i32, i32) {
    %c0_i32 = arith.constant 0 : i32
    %c0_i32_0 = arith.constant 0 : i32
    %c0_i32_1 = arith.constant 0 : i32
    return %arg0, %c0_i32, %c0_i32_0 : i32, i32, i32
  }
  func.func @transform_1(%arg0: i32) -> (i32, i32, i32) {
    %c0_i32 = arith.constant 0 : i32
    %c0_i32_0 = arith.constant 0 : i32
    %c0_i32_1 = arith.constant 0 : i32
    return %arg0, %c0_i32, %c0_i32_0 : i32, i32, i32
  }
  func.func @transform_2(%arg0: i32) -> (i32, i32) {
    %c0_i32 = arith.constant 0 : i32
    %c0_i32_0 = arith.constant 0 : i32
    %c0_i32_1 = arith.constant 0 : i32
    return %c0_i32, %c0_i32_0 : i32, i32
  }
  func.func @transform_3(%arg0: i32) -> (i32, i32) {
    %c0_i32 = arith.constant 0 : i32
    %c0_i32_0 = arith.constant 0 : i32
    %c0_i32_1 = arith.constant 0 : i32
    return %c0_i32, %c0_i32_0 : i32, i32
  }
  func.func @transform_4(%arg0: i32) -> (i32, i32) {
    %c0_i32 = arith.constant 0 : i32
    %c0_i32_0 = arith.constant 0 : i32
    %c0_i32_1 = arith.constant 0 : i32
    return %c0_i32, %c0_i32_0 : i32, i32
  }
  func.func @transform_5(%arg0: i32) -> (i32, i32) {
    %c0_i32 = arith.constant 0 : i32
    %c0_i32_0 = arith.constant 0 : i32
    %c0_i32_1 = arith.constant 0 : i32
    return %c0_i32, %c0_i32_0 : i32, i32
  }
  func.func @transform_6(%arg0: i32) -> (i32, i32) {
    %c0_i32 = arith.constant 0 : i32
    %c0_i32_0 = arith.constant 0 : i32
    %c0_i32_1 = arith.constant 0 : i32
    return %c0_i32, %c0_i32_0 : i32, i32
  }
  func.func @transform_7(%arg0: i32) -> (i32, i32) {
    %c0_i32 = arith.constant 0 : i32
    %c0_i32_0 = arith.constant 0 : i32
    %c0_i32_1 = arith.constant 0 : i32
    return %c0_i32, %c0_i32_0 : i32, i32
  }
  func.func @transform_8(%arg0: i32) -> (i32, i32, i32) {
    %c0_i32 = arith.constant 0 : i32
    %c0_i32_0 = arith.constant 0 : i32
    %c0_i32_1 = arith.constant 0 : i32
    return %arg0, %c0_i32, %c0_i32_0 : i32, i32, i32
  }
}

module attributes {stable_mosaic.version = 11 : i64} {
  func.func @avwgcn2_kernel(%arg0: i32, %arg1: memref<4x16x8xf32, #tpu.memory_space<vmem>>, %arg2: memref<1x16x32xf32, #tpu.memory_space<vmem>>, %arg3: memref<16x16xf32, #tpu.memory_space<vmem>>, %arg4: memref<32x4xf32, #tpu.memory_space<vmem>>, %arg5: memref<16x1xf32, #tpu.memory_space<vmem>>, %arg6: memref<8x8xf32, #tpu.memory_space<vmem>>, %arg7: memref<8x8xf32, #tpu.memory_space<vmem>>, %arg8: memref<8x1xf32, #tpu.memory_space<vmem>>, %arg9: memref<1x8x64xf32, #tpu.memory_space<vmem>>) attributes {dimension_semantics = [#tpu.dimension_semantics<parallel>], iteration_bounds = array<i64: 2>, scalar_prefetch = 0 : i64, scratch_operands = 0 : i64, tpu.core_type = #tpu.core_type<tc>, window_params = [{transform_indices = @transform_0, window_bounds = array<i64: 4, 16, 8>}, {transform_indices = @transform_1, window_bounds = array<i64: 1, 16, 32>}, {pipeline_mode = #tpu.pipeline_mode<synchronous>, transform_indices = @transform_2, window_bounds = array<i64: 16, 16>}, {pipeline_mode = #tpu.pipeline_mode<synchronous>, transform_indices = @transform_3, window_bounds = array<i64: 32, 4>}, {pipeline_mode = #tpu.pipeline_mode<synchronous>, transform_indices = @transform_4, window_bounds = array<i64: 16, 1>}, {pipeline_mode = #tpu.pipeline_mode<synchronous>, transform_indices = @transform_5, window_bounds = array<i64: 8, 8>}, {pipeline_mode = #tpu.pipeline_mode<synchronous>, transform_indices = @transform_6, window_bounds = array<i64: 8, 8>}, {pipeline_mode = #tpu.pipeline_mode<synchronous>, transform_indices = @transform_7, window_bounds = array<i64: 8, 1>}, {transform_indices = @transform_8, window_bounds = array<i64: 1, 8, 64>}]} {
    %c0 = arith.constant 0 : index
    %c0_0 = arith.constant 0 : index
    %c0_1 = arith.constant 0 : index
    %0 = vector.load %arg1[%c0, %c0_0, %c0_1] : memref<4x16x8xf32, #tpu.memory_space<vmem>>, vector<4x16x8xf32>
    %c0_2 = arith.constant 0 : index
    %c0_3 = arith.constant 0 : index
    %c0_4 = arith.constant 0 : index
    %1 = vector.load %arg2[%c0_2, %c0_3, %c0_4] : memref<1x16x32xf32, #tpu.memory_space<vmem>>, vector<1x16x32xf32>
    %2 = vector.shape_cast %1 : vector<1x16x32xf32> to vector<16x32xf32>
    %c0_5 = arith.constant 0 : index
    %c0_6 = arith.constant 0 : index
    %3 = vector.load %arg3[%c0_5, %c0_6] : memref<16x16xf32, #tpu.memory_space<vmem>>, vector<16x16xf32>
    %cst = arith.constant dense<0.000000e+00> : vector<16x32xf32>
    %4 = tpu.matmul %3, %2, %cst {dimension_numbers = #tpu.dot_dimension_numbers<[1], [0], [0], [1], [0, 0, 1, 1], [], []>} : vector<16x16xf32>, vector<16x32xf32>, vector<16x32xf32> -> vector<16x32xf32>
    %5 = arith.mulf %2, %4 : vector<16x32xf32>
    %c0_7 = arith.constant 0 : index
    %c0_8 = arith.constant 0 : index
    %6 = vector.load %arg4[%c0_7, %c0_8] : memref<32x4xf32, #tpu.memory_space<vmem>>, vector<32x4xf32>
    %cst_9 = arith.constant dense<0.000000e+00> : vector<16x4xf32>
    %7 = tpu.matmul %5, %6, %cst_9 {dimension_numbers = #tpu.dot_dimension_numbers<[1], [0], [0], [1], [0, 0, 1, 1], [], []>} : vector<16x32xf32>, vector<32x4xf32>, vector<16x4xf32> -> vector<16x4xf32>
    %8 = tpu.transpose %7, [1, 0] : vector<16x4xf32> -> vector<4x16xf32>
    %9 = vector.shape_cast %8 : vector<4x16xf32> to vector<4x16x1xf32>
    %10 = vector.broadcast %9 : vector<4x16x1xf32> to vector<4x16x8xf32>
    %11 = arith.mulf %10, %0 : vector<4x16x8xf32>
    %12 = vector.shape_cast %11 : vector<4x16x8xf32> to vector<64x8xf32>
    %c0_10 = arith.constant 0 : index
    %c0_11 = arith.constant 0 : index
    %13 = vector.load %arg6[%c0_10, %c0_11] : memref<8x8xf32, #tpu.memory_space<vmem>>, vector<8x8xf32>
    %cst_12 = arith.constant dense<0.000000e+00> : vector<64x8xf32>
    %14 = tpu.matmul %12, %13, %cst_12 {dimension_numbers = #tpu.dot_dimension_numbers<[1], [0], [0], [1], [0, 0, 1, 1], [], []>} : vector<64x8xf32>, vector<8x8xf32>, vector<64x8xf32> -> vector<64x8xf32>
    %c0_13 = arith.constant 0 : index
    %c0_14 = arith.constant 0 : index
    %15 = vector.load %arg5[%c0_13, %c0_14] : memref<16x1xf32, #tpu.memory_space<vmem>>, vector<16x1xf32>
    %16 = vector.shape_cast %15 : vector<16x1xf32> to vector<1x16x1xf32>
    %17 = vector.broadcast %16 : vector<1x16x1xf32> to vector<4x16x8xf32>
    %18 = arith.mulf %17, %0 : vector<4x16x8xf32>
    %19 = vector.shape_cast %14 : vector<64x8xf32> to vector<4x16x8xf32>
    %20 = arith.addf %18, %19 : vector<4x16x8xf32>
    %cst_15 = arith.constant 0.000000e+00 : f32
    %21 = vector.broadcast %cst_15 : f32 to vector<4x16x8xf32>
    %22 = arith.maximumf %20, %21 : vector<4x16x8xf32>
    %23 = vector.shape_cast %22 : vector<4x16x8xf32> to vector<64x8xf32>
    %c0_16 = arith.constant 0 : index
    %c0_17 = arith.constant 0 : index
    %24 = vector.load %arg7[%c0_16, %c0_17] : memref<8x8xf32, #tpu.memory_space<vmem>>, vector<8x8xf32>
    %cst_18 = arith.constant dense<0.000000e+00> : vector<8x64xf32>
    %25 = tpu.matmul %24, %23, %cst_18 {dimension_numbers = #tpu.dot_dimension_numbers<[1], [1], [0], [0], [0, 0, 1, 0], [], []>} : vector<8x8xf32>, vector<64x8xf32>, vector<8x64xf32> -> vector<8x64xf32>
    %c0_19 = arith.constant 0 : index
    %c0_20 = arith.constant 0 : index
    %26 = vector.load %arg8[%c0_19, %c0_20] : memref<8x1xf32, #tpu.memory_space<vmem>>, vector<8x1xf32>
    %27 = vector.broadcast %26 : vector<8x1xf32> to vector<8x64xf32>
    %28 = arith.addf %25, %27 : vector<8x64xf32>
    %c0_21 = arith.constant 0 : index
    %c0_22 = arith.constant 0 : index
    %c0_23 = arith.constant 0 : index
    %29 = vector.load %arg9[%c0_21, %c0_22, %c0_23] : memref<1x8x64xf32, #tpu.memory_space<vmem>>, vector<1x8x64xf32>
    %30 = vector.shape_cast %29 : vector<1x8x64xf32> to vector<8x64xf32>
    %31 = vector.shape_cast %28 : vector<8x64xf32> to vector<1x8x64xf32>
    tpu.vector_store %arg9[%c0_21, %c0_22, %c0_23], %31 {strides = array<i32>} : memref<1x8x64xf32, #tpu.memory_space<vmem>>, vector<1x8x64xf32>,
    return
  }
  func.func @transform_0(%arg0: i32) -> (i32, i32, i32) {
    %c0_i32 = arith.constant 0 : i32
    %c0_i32_0 = arith.constant 0 : i32
    %c0_i32_1 = arith.constant 0 : i32
    return %arg0, %c0_i32, %c0_i32_0 : i32, i32, i32
  }
  func.func @transform_1(%arg0: i32) -> (i32, i32, i32) {
    %c0_i32 = arith.constant 0 : i32
    %c0_i32_0 = arith.constant 0 : i32
    %c0_i32_1 = arith.constant 0 : i32
    return %arg0, %c0_i32, %c0_i32_0 : i32, i32, i32
  }
  func.func @transform_2(%arg0: i32) -> (i32, i32) {
    %c0_i32 = arith.constant 0 : i32
    %c0_i32_0 = arith.constant 0 : i32
    %c0_i32_1 = arith.constant 0 : i32
    return %c0_i32, %c0_i32_0 : i32, i32
  }
  func.func @transform_3(%arg0: i32) -> (i32, i32) {
    %c0_i32 = arith.constant 0 : i32
    %c0_i32_0 = arith.constant 0 : i32
    %c0_i32_1 = arith.constant 0 : i32
    return %c0_i32, %c0_i32_0 : i32, i32
  }
  func.func @transform_4(%arg0: i32) -> (i32, i32) {
    %c0_i32 = arith.constant 0 : i32
    %c0_i32_0 = arith.constant 0 : i32
    %c0_i32_1 = arith.constant 0 : i32
    return %c0_i32, %c0_i32_0 : i32, i32
  }
  func.func @transform_5(%arg0: i32) -> (i32, i32) {
    %c0_i32 = arith.constant 0 : i32
    %c0_i32_0 = arith.constant 0 : i32
    %c0_i32_1 = arith.constant 0 : i32
    return %c0_i32, %c0_i32_0 : i32, i32
  }
  func.func @transform_6(%arg0: i32) -> (i32, i32) {
    %c0_i32 = arith.constant 0 : i32
    %c0_i32_0 = arith.constant 0 : i32
    %c0_i32_1 = arith.constant 0 : i32
    return %c0_i32, %c0_i32_0 : i32, i32
  }
  func.func @transform_7(%arg0: i32) -> (i32, i32) {
    %c0_i32 = arith.constant 0 : i32
    %c0_i32_0 = arith.constant 0 : i32
    %c0_i32_1 = arith.constant 0 : i32
    return %c0_i32, %c0_i32_0 : i32, i32
  }
  func.func @transform_8(%arg0: i32) -> (i32, i32, i32) {
    %c0_i32 = arith.constant 0 : i32
    %c0_i32_0 = arith.constant 0 : i32
    %c0_i32_1 = arith.constant 0 : i32
    return %arg0, %c0_i32, %c0_i32_0 : i32, i32, i32
  }
}

</mosaic_0001>

<bundles_post_ra>
// kernel: tpu_custom_call.1
= control target key start
LH: loop header
LB: loop body
LE: loop exit
PB: predicated region body
PF: predicated region fallthrough
CT: control target
= control target key end

     0   :  { %13 = vsyncpa [#allocation3], 0  ;;  %s1379_s0 = inlined_call_operand.vmem [shape: f32[8,16,8], index: 0, kind: input, shape index: {}]   ;;  %s1380_s1 = inlined_call_operand.vmem [shape: f32[2,16,32], index: 1, kind: input, shape index: {}]   ;;  %s1381_s2 = inlined_call_operand.vmem [shape: f32[16,16], index: 2, kind: input, shape index: {}]   ;;  %s1382_s3 = inlined_call_operand.vmem [shape: f32[32,4], index: 3, kind: input, shape index: {}]   ;;  %s1383_s4 = inlined_call_operand.vmem [shape: f32[16,1], index: 4, kind: input, shape index: {}]   ;;  %s1384_s5 = inlined_call_operand.vmem [shape: f32[8,8], index: 5, kind: input, shape index: {}]   ;;  %s1385_s6 = inlined_call_operand.vmem [shape: f32[8,8], index: 6, kind: input, shape index: {}]   ;;  %s1386_s7 = inlined_call_operand.vmem [shape: f32[8,1], index: 7, kind: input, shape index: {}]   ;;  %s1387_s8 = inlined_call_operand.hbm [shape: f32[2,8,64], index: 8, kind: output, shape index: {}]  }
   0x1   :  { %15 = vsyncpa [#allocation3 + $0x1], 0  ;;  %s1224_s27 = smov 0   ;;  %s1226_s28 = smov 0  }
   0x2   :  { %s1228_s29 = smov 0   ;;  %s1230_s30 = smov 0  }
   0x3 LB: > { %s1245_s9 = sadd.s32 4294967295, %s1173_s30   ;;  %s953_s10 = sadd.s32 4294967294, %s1173_s30   ;;  %s1173_s30 = sphi %s1230_s30, %s1393_s30   ;;  %s1169_s29 = sphi %s1228_s29, %s1392_s29   ;;  %s1165_s28 = sphi %s1226_s28, %s1391_s28   ;;  %s1161_s27 = sphi %s1224_s27, %s1390_s27  }
   0x4   : > { %s1249_s11 = sadd.s32 1, %s1173_s30   ;;  %s206_s12 = sadd.s32 1, %s1169_s29 }
   0x5   : > { %s203_s13 = ssub.s32 %s1173_s30, %s1249_s11  ;;  %p216_p0 = scmp.ne.s32.totalorder %s1169_s29, %s1165_s28 }
   0x6   : > { %p204_p1 = scmp.eq.s32.totalorder %s203_s13, 0  ;;  %p217_p2 = scmp.eq.s32.totalorder %s1245_s9, 1 }
   0x7   : > { %p222_p3 = scmp.ne.s32.totalorder %s1165_s28, %s1161_s27  ;;  %p223_p4 = scmp.eq.s32.totalorder %s953_s10, 1 }
   0x8   : > { %s1260_s14 = scalar_select %p204_p1, %s1169_s29, %s206_s12  }
   0x9   : > { %p1262_p5 = por %p217_p2, %p216_p0  ;;  %p1266_p6 = por %p223_p4, %p222_p3 }
   0xa   : > { %p956_p7 = scmp.ge.s32.totalorder %s1173_s30, 1  ;;  %p277_p8 = scmp.lt.s32.totalorder %s1173_s30, 3 }
   0xc   : > { %p278_p9 = pnand %p956_p7, %p277_p8 }
   0xd   : > { %p324_p10 = scmp.lt.s32.totalorder (!%p278_p9), %s1245_s9, 1  ;;  %s958_s13 = sshll.u32 (!%p278_p9), %s1245_s9, 2 }
   0xe   : > { %281 = sbr.rel (%p278_p9) target bundleno = 1125 (0x465), region = 52  ;;  %p318_p11 = scmp.lt.s32.totalorder (!%p278_p9), %s958_s13, 7 }
   0xf   : > { %s985_s25 = sshll.u32 (!%p278_p9), %s1245_s9, 7 }
  0x13   : > { %v339_v0 = vld [vmem:[%s1381_s2] sm:$0xff]  ;;  %vm341_vm0 = vcmask 130048   ;;  %s325_s19 = scalar_select %p324_p10, %s1245_s9, 1  ;;  %v340_v3 = vld [vmem:[%s1381_s2 + $0x8] sm:$0xff]  ;;  %v428_v4 = vld [vmem:[%s1382_s3 + $0x18] sm:$0xff]  ;;  %vm429_vm1 = vcmask 261120   ;;  %v543_v14 = vlaneseq }
  0x14   : > { %1022 = vmatprep.mubr.msk.f32.mxu1 %vm341_vm0, %v339_v0  ;;  %v427_v5 = vld [vmem:[%s1382_s3 + $0x10] sm:$0xff]  ;;  %v426_v6 = vld [vmem:[%s1382_s3 + $0x8] sm:$0xff]  ;;  %v425_v7 = vld [vmem:[%s1382_s3] sm:$0xff]  ;;  %v1175_v25 = vmov 0   ;;  %s1395_s13 = smov (!%p318_p11, %s958_s13), 7  ;;  %vm596_vm2 = vcmask 64512  }
  0x15   : > { %s989_s20 = sshll.u32 %s325_s19, 4  ;;  %v544_v15 = vshrl.u32 %v543_v14, 7  ;;  %v595_v16 = vld [vmem:[%s1384_s5] sm:$0xff]  ;;  %1111 = vset.pattern.permute.xlu1 %v1175_v25  ;;  %v727_v27 = vld [vmem:[%s1383_s4 + $0x8] sm:$0xff]  ;;  %s988_s17 = sshll.u32 %s1395_s13, 4  ;;  %v1176_v54 = vmov 0.0  }
  0x16   : > { %s328_s23 = scalar_lea.vmem %s1380_s1, %s989_s20  ;;  %v726_v28 = vld [vmem:[%s1383_s4] sm:$0xff]  ;;  %s322_s20 = scalar_lea.vmem %s1379_s0, %s988_s17  ;;  %1050 = vmatprep.subr.mxu0 %v1176_v54  ;;  %vm1177_vm3 = vmmov 0   ;;  %vm866_vm4 = vcmask 523264  }
  0x17   : > { %v338_v1 = vld [vmem:[%s328_s23 + $0x8] sm:$0xff]  ;;  %v337_v2 = vld [vmem:[%s328_s23] sm:$0xff]  ;;  %v556_v17 = vsub.s32 1, %v544_v15  ;;  %v545_v18 = vsub.s32 0, %v544_v15  ;;  %v567_v22 = vsub.s32 2, %v544_v15  ;;  %v578_v24 = vsub.s32 3, %v544_v15  ;;  %1066 = vmatprep.mubr.msk.f32.mxu0 %vm1177_vm3, %v1176_v54  ;;  %s1344_s17 = scalar_lea.hbm %s1387_s8, %s985_s25 }
  0x18   : > { %1018 = vmatprep.subr.mxu1 %v338_v1  ;;  %v763_v29 = vld [vmem:[%s1386_s7] sm:$0xff]  ;;  %v1314_v33 = vld [vmem:[%s322_s20 + $0x8] sm:$0xff]  ;;  %v331_v35 = vld [vmem:[%s322_s20 + $0x10] sm:$0xff]  ;;  %s314_s23 = sand.u32 1, %s1165_s28   ;;  %s1178_s9 = smov [#allocation2]  }
  0x19   : > { %1019 = vmatpush3.msra.mxu1 %v338_v1  ;;  %v1311_v30 = vld [vmem:[%s322_s20] sm:$0xff]  ;;  %v332_v39 = vld [vmem:[%s322_s20 + $0x18] sm:$0xff]  ;;  %v334_v45 = vld [vmem:[%s322_s20 + $0x28] sm:$0xff]  ;;  %s957_s24 = sshll.u32 %s314_s23, 3  ;;  %s869_s18 = scalar_lea.sflag [#allocation3], %s314_s23 }
  0x1a   : > { %1020 = vmatprep.subr.mxu1 %v337_v2  ;;  %v333_v42 = vld [vmem:[%s322_s20 + $0x20] sm:$0xff]  ;;  %v335_v48 = vld [vmem:[%s322_s20 + $0x30] sm:$0xff]  ;;  %v336_v51 = vld [vmem:[%s322_s20 + $0x38] sm:$0xff]  ;;  %s316_s26 = scalar_lea.vmem [#allocation2], %s957_s24  ;;  %s1117_s20 = sshll.u32 %s1178_s9, 4  ;;  %s1118_s20 = int_to_ptr.vmem [resolvable:$false] %s1117_s20 }
  0x1b   : > { %1021 = vmatpush3.msra.mxu1 %v337_v2  ;;  %s882_s10 = sshll.u32 %s316_s26, 4  ;;  %s1119_s21 = scalar_lea.vmem %s1118_s20, 256  ;;  %s883_s10 = int_to_ptr.vmem [resolvable:$true] %s882_s10 }
  0x1c   : > { %1023 = vmatmul.mubr.msk.f32.vlgmr.msra.gmra.mxu1 %vm341_vm0, %v340_v3  ;;  %1025 = vmatprep.subr.mxu1 %v428_v4  ;;  %s1113_s19 = scalar_lea.vmem %s883_s10, 128  ;;  %p1120_p1 = scmp.lt.s32.totalorder %s883_s10, %s1118_s20 }
  0x1d   : > { %1026 = vmatpush3.msra.mxu1 %v428_v4  ;;  %p1114_p12 = scmp.ne.s32.totalorder %s883_s10, %s1113_s19  ;;  %p1121_p2 = scmp.lt.s32.totalorder %s1119_s21, %s1113_s19 }
  0x1e   : > { %1027 = vmatprep.subr.mxu1 %v427_v5 }
  0x1f   : > { %1028 = vmatpush3.msra.mxu1 %v427_v5  ;;  %p1115_p13 = pnand %p1114_p12, %p1262_p5  ;;  %p1122_p3 = por %p1121_p2, %p1120_p1 }
  0x20   : > { %1029 = vmatprep.subr.mxu1 %v426_v6 }
  0x21   : > { %1030 = vmatpush3.msra.mxu1 %v426_v6  ;;  %p1116_p0 = pneg %p1115_p13 }
  0x22   : > { %1031 = vmatprep.subr.mxu1 %v425_v7 }
  0x23   : > { %1032 = vmatpush3.msra.mxu1 %v425_v7  ;;  %p1123_p4 = pnand %p1122_p3, %p1116_p0 }
  0x24   : > { %1036 = vmatprep.subr.mxu1 %v595_v16 }
  0xdc   : > { %v1024_v8 = vpop.f32.mrf.mxu1 }
  0xdd   : > { %v424_v11 = vmul.f32 %v1024_v8, %v338_v1 }
  0xde   : > { %v414_v9 = vpop.f32.mrf.mxu1 }
  0xdf   : > { %v423_v10 = vmul.f32 %v414_v9, %v337_v2 }
  0xe1   : > { %1033 = vmatprep.mubr.msk.f32.mxu1 %vm429_vm1, %v423_v10 }
  0xe2   : > { %1034 = vmatmul.mubr.msk.f32.vlgmr.msra.gmra.mxu1 %vm429_vm1, %v424_v11 }
  0xe3   : > { %1037 = vmatpush3.msra.mxu1 %v595_v16 }
 0x1a2   : > { %v1035_v12 = vpop.f32.mrf.mxu1 }
 0x1a4   : > { %v502_v13 = vpop.f32.mrf.mxu1 }
 0x1a5   : > { %511 = vxpose.xlu0.b32.start [1/2] (short) (narrow) %v502_v13, 8 }
 0x1a9   : > { %512 = vxpose.xlu0.b32.end [2/2] (short) (narrow) %v1035_v12, 8 }
 0x1d2   : > { %1112 = vset.pattern.permute.xlu0 %v1175_v25  ;;  %v762_v25 = vld [vmem:[%s1385_s6] sm:$0xff] }
 0x221   : > { %v527_v19 = vpop.trf.xlu0 }
 0x222   : > { %v557_v20 = vrot.slane %v527_v19, %v556_v17  ;;  %v546_v21 = vrot.slane %v527_v19, %v545_v18  ;;  %v568_v23 = vrot.slane %v527_v19, %v567_v22  ;;  %v579_v26 = vrot.slane %v527_v19, %v578_v24 }
 0x224   : > { %559 = vbcast.lane.b32.xlu0 %v557_v20, 256  ;;  %548 = vbcast.lane.b32.xlu1 %v546_v21, 256 }
 0x228   : > { %552 = vbcast.lane.b32.xlu1 %v546_v21, 264 }
 0x22c   : > { %563 = vbcast.lane.b32.xlu1 %v557_v20, 264 }
 0x230   : > { %570 = vbcast.lane.b32.xlu1 %v568_v23, 256 }
 0x234   : > { %574 = vbcast.lane.b32.xlu1 %v568_v23, 264 }
 0x238   : > { %581 = vbcast.lane.b32.xlu1 %v579_v26, 256 }
 0x23c   : > { %585 = vbcast.lane.b32.xlu1 %v579_v26, 264 }
 0x240   : > { %735 = vperm.xlu1 %1111, %v727_v27  }
 0x244   : > { %730 = vperm.xlu1 %1111, %v726_v28  }
 0x248   : > { %766 = vperm.xlu1 %1111, %v763_v29  }
 0x296   : > { %v549_v31 = vpop.permute.xlu1 %548  ;;  %v560_v34 = vpop.permute.xlu0 %559 }
 0x297   : > { %v587_v32 = vmul.f32 %v549_v31, %v1311_v30  ;;  %v589_v38 = vmul.f32 %v560_v34, %v331_v35 }
 0x299   : > { %1038 = vmatprep.mubr.msk.f32.mxu1 %vm596_vm2, %v587_v32 }
 0x29a   : > { %v553_v36 = vpop.permute.xlu1 %552 }
 0x29b   : > { %v588_v37 = vmul.f32 %v553_v36, %v1314_v33 }
 0x29d   : > { %1039 = vmatmul.mubr.msk.f32.vlgmr.msra.gmra.mxu1 %vm596_vm2, %v588_v37 }
 0x29e   : > { %v564_v40 = vpop.permute.xlu1 %563  ;;  %1041 = vmatprep.mubr.msk.f32.mxu1 %vm596_vm2, %v589_v38 }
 0x29f   : > { %v590_v41 = vmul.f32 %v564_v40, %v332_v39 }
 0x2a1   : > { %1042 = vmatmul.mubr.msk.f32.gmra.mxu1 %vm596_vm2, %v590_v41 }
 0x2a2   : > { %v571_v43 = vpop.permute.xlu1 %570 }
 0x2a3   : > { %v591_v44 = vmul.f32 %v571_v43, %v333_v42 }
 0x2a5   : > { %1044 = vmatprep.mubr.msk.f32.mxu1 %vm596_vm2, %v591_v44 }
 0x2a6   : > { %v575_v46 = vpop.permute.xlu1 %574 }
 0x2a7   : > { %v592_v47 = vmul.f32 %v575_v46, %v334_v45 }
 0x2a9   : > { %1045 = vmatmul.mubr.msk.f32.gmra.mxu1 %vm596_vm2, %v592_v47 }
 0x2aa   : > { %v582_v49 = vpop.permute.xlu1 %581 }
 0x2ab   : > { %v593_v50 = vmul.f32 %v582_v49, %v335_v48 }
 0x2ad   : > { %1047 = vmatprep.mubr.msk.f32.mxu1 %vm596_vm2, %v593_v50 }
 0x2ae   : > { %v586_v52 = vpop.permute.xlu1 %585 }
 0x2af   : > { %v594_v53 = vmul.f32 %v586_v52, %v336_v51 }
 0x2b1   : > { %1048 = vmatmul.mubr.msk.f32.gmra.mxu1 %vm596_vm2, %v594_v53 }
 0x2bb   : > { %v736_v59 = vpop.permute.xlu1 %735 }
 0x2bc   : > { %v745_v61 = vmul.f32 %v736_v59, %v336_v51  ;;  %v743_v4 = vmul.f32 %v736_v59, %v334_v45  ;;  %v741_v10 = vmul.f32 %v736_v59, %v332_v39  ;;  %v739_v16 = vmul.f32 %v736_v59, %v1314_v33 }
 0x2bf   : > { %v731_v63 = vpop.permute.xlu1 %730 }
 0x2c0   : > { %v744_v2 = vmul.f32 %v731_v63, %v335_v48  ;;  %v742_v8 = vmul.f32 %v731_v63, %v333_v42  ;;  %v740_v14 = vmul.f32 %v731_v63, %v331_v35  ;;  %v738_v20 = vmul.f32 %v731_v63, %v1311_v30 }
 0x2c3   : > { %v767_v26 = vpop.permute.xlu1 %766 }
 0x35d   : > { %v1040_v55 = vpop.f32.mrf.mxu1 }
 0x35e   : > { %v747_v19 = vadd.f32 %v1040_v55, %v739_v16 }
 0x35f   : > { %v687_v56 = vpop.f32.mrf.mxu1 }
 0x360   : > { %v755_v22 = vmax.f32 %v747_v19, 0.0  ;;  %v746_v23 = vadd.f32 %v738_v20, %v687_v56 }
 0x361   : > { %v1043_v57 = vpop.f32.mrf.mxu1 }
 0x362   : > { %v749_v13 = vadd.f32 %v1043_v57, %v741_v10  ;;  %v754_v24 = vmax.f32 %v746_v23, 0.0 }
 0x363   : > { %v697_v58 = vpop.f32.mrf.mxu1 }
 0x364   : > { %v757_v17 = vmax.f32 %v749_v13, 0.0  ;;  %v748_v18 = vadd.f32 %v740_v14, %v697_v58 }
 0x366   : > { %v756_v21 = vmax.f32 %v748_v18, 0.0 }
 0x369   : > { %v1046_v60 = vpop.f32.mrf.mxu1 }
 0x36a   : > { %v751_v7 = vadd.f32 %v1046_v60, %v743_v4 }
 0x36b   : > { %v707_v62 = vpop.f32.mrf.mxu1 }
 0x36c   : > { %v759_v11 = vmax.f32 %v751_v7, 0.0  ;;  %v750_v12 = vadd.f32 %v742_v8, %v707_v62 }
 0x36e   : > { %v758_v15 = vmax.f32 %v750_v12, 0.0 }
 0x371   : > { %v1049_v0 = vpop.f32.mrf.mxu1 }
 0x372   : > { %v753_v1 = vadd.f32 %v1049_v0, %v745_v61 }
 0x373   : > { %v717_v3 = vpop.f32.mrf.mxu1 }
 0x374   : > { %v761_v5 = vmax.f32 %v753_v1, 0.0  ;;  %v752_v6 = vadd.f32 %v744_v2, %v717_v3 }
 0x376   : > { %1051 = vmatpush3.xpose.msk.msra.mxu0 %vm596_vm2, %v761_v5  ;;  %v760_v9 = vmax.f32 %v752_v6, 0.0 }
 0x377   : > { %1052 = vmatprep.subr.mxu0 %v1176_v54 }
 0x37a   : > { %1053 = vmatpush3.xpose.msk.msra.mxu0 %vm596_vm2, %v760_v9 }
 0x37b   : > { %1054 = vmatprep.subr.mxu0 %v1176_v54 }
 0x37e   : > { %1055 = vmatpush3.xpose.msk.msra.mxu0 %vm596_vm2, %v759_v11 }
 0x37f   : > { %1056 = vmatprep.subr.mxu0 %v1176_v54 }
 0x382   : > { %1057 = vmatpush3.xpose.msk.msra.mxu0 %vm596_vm2, %v758_v15 }
 0x383   : > { %1058 = vmatprep.subr.mxu0 %v1176_v54 }
 0x386   : > { %1059 = vmatpush3.xpose.msk.msra.mxu0 %vm596_vm2, %v757_v17 }
 0x387   : > { %1060 = vmatprep.subr.mxu0 %v1176_v54 }
 0x38a   : > { %1061 = vmatpush3.xpose.msk.msra.mxu0 %vm596_vm2, %v756_v21 }
 0x38b   : > { %1062 = vmatprep.subr.mxu0 %v1176_v54 }
 0x38e   : > { %1063 = vmatpush3.xpose.msk.msra.mxu0 %vm596_vm2, %v755_v22 }
 0x38f   : > { %1064 = vmatprep.subr.mxu0 %v1176_v54 }
 0x392   : > { %1065 = vmatpush3.xpose.msk.msra.mxu0 %vm596_vm2, %v754_v24 }
 0x395   : > { %1067 = vmatmul.mubr.msk.f32.vlgmr.msra.gmra.mxu0 %vm596_vm2, %v762_v25 }
 0x455   : > { %v862_v27 = vpop.f32.mrf.mxu0 }
 0x456   : > { %v863_v28 = vadd.f32 %v862_v27, %v767_v26 }
 0x457   : > { %v1068_v29 = vpop.f32.mrf.mxu0 }
 0x458   : > { %867 = vst.msk [vmem:[%s316_s26] sm:$0xff] %vm866_vm4, %v863_v28 }
 0x459   : > { %1126 = shalt.err (!%p1123_p4)
}
 0x45a   : > { %s1127_s22 = scalar_lea.hbm %s1344_s17, 128  ;;  %s1131_s25 = scalar_lea.hbm %s1387_s8, 256 }
 0x45b   : > { %p1128_p7 = scmp.ne.s32.totalorder %s1344_s17, %s1127_s22  ;;  %p1132_p10 = scmp.lt.s32.totalorder %s1344_s17, %s1387_s8 }
 0x45c   : > { %p1133_p11 = scmp.lt.s32.totalorder %s1131_s25, %s1127_s22 }
 0x45d   : > { %p1129_p8 = pnand %p1128_p7, %p1262_p5 }
 0x45e   : > { %p1134_p12 = por %p1133_p11, %p1132_p10 }
 0x45f   : > { %p1130_p9 = pneg %p1129_p8 }
 0x461   : > { %p1135_p13 = pnand %p1134_p12, %p1130_p9 }
 0x463   : > { %1138 = shalt.err (!%p1135_p13)
}
 0x464   : > { %1069 = dma.vmem_to_hbm [thread:$0]  (%p1262_p5), %s883_s10, 128, %s1344_s17, %s869_s18  }
 0x465 PF: > { %p1075_p0 = scmp.ge.s32.totalorder %s1173_s30, 2  ;;  %s894_s13 = sand.u32 1, %s1161_s27  }
 0x466   : > { %s895_s19 = scalar_lea.sflag [#allocation3], %s894_s13 }
 0x467   : > { %p1072_p1 = pnand %p1075_p0, %p1266_p6 }
 0x469   : > { %p1073_p2 = pneg %p1072_p1 }
 0x46b   : > { %1156 = dma.done.wait (%p1073_p2), %s895_s19, 128  }
 0x46c   : > { %1158 = vsyncadd (%p1073_p2), %s895_s19, 4294967168  ;;  %p18_p3 = scmp.ge.s32.totalorder %s1249_s11, 4   ;;  %s1390_s27 = smov %s1165_s28 }
 0x46d   : > { %s1391_s28 = smov %s1169_s29  ;;  %s1392_s29 = smov %s1260_s14 }
 0x46e   : > { %s1393_s30 = smov %s1249_s11  ;;  %20 = sbr.rel (!%p18_p3) target bundleno = 3 (0x3), region = 90 }
 0x473   :  { %900 = vsyncpa [#allocation3], 1 }
 0x474   :  { %902 = vsyncpa [#allocation3 + $0x1], 1 }

// kernel: tpu_custom_call.1
= control target key start
LH: loop header
LB: loop body
LE: loop exit
PB: predicated region body
PF: predicated region fallthrough
CT: control target
= control target key end

     0   :  { %13 = vsyncpa [#allocation3], 0  ;;  %s1379_s0 = inlined_call_operand.vmem [shape: f32[8,16,8], index: 0, kind: input, shape index: {}]   ;;  %s1380_s1 = inlined_call_operand.vmem [shape: f32[2,16,32], index: 1, kind: input, shape index: {}]   ;;  %s1381_s2 = inlined_call_operand.vmem [shape: f32[16,16], index: 2, kind: input, shape index: {}]   ;;  %s1382_s3 = inlined_call_operand.vmem [shape: f32[32,4], index: 3, kind: input, shape index: {}]   ;;  %s1383_s4 = inlined_call_operand.vmem [shape: f32[16,1], index: 4, kind: input, shape index: {}]   ;;  %s1384_s5 = inlined_call_operand.vmem [shape: f32[8,8], index: 5, kind: input, shape index: {}]   ;;  %s1385_s6 = inlined_call_operand.vmem [shape: f32[8,8], index: 6, kind: input, shape index: {}]   ;;  %s1386_s7 = inlined_call_operand.vmem [shape: f32[8,1], index: 7, kind: input, shape index: {}]   ;;  %s1387_s8 = inlined_call_operand.hbm [shape: f32[2,8,64], index: 8, kind: output, shape index: {}]  }
   0x1   :  { %15 = vsyncpa [#allocation3 + $0x1], 0  ;;  %s1224_s27 = smov 0   ;;  %s1226_s28 = smov 0  }
   0x2   :  { %s1228_s29 = smov 0   ;;  %s1230_s30 = smov 0  }
   0x3 LB: > { %s1245_s9 = sadd.s32 4294967295, %s1173_s30   ;;  %s953_s10 = sadd.s32 4294967294, %s1173_s30   ;;  %s1173_s30 = sphi %s1230_s30, %s1393_s30   ;;  %s1169_s29 = sphi %s1228_s29, %s1392_s29   ;;  %s1165_s28 = sphi %s1226_s28, %s1391_s28   ;;  %s1161_s27 = sphi %s1224_s27, %s1390_s27  }
   0x4   : > { %s1249_s11 = sadd.s32 1, %s1173_s30   ;;  %s206_s12 = sadd.s32 1, %s1169_s29 }
   0x5   : > { %s203_s13 = ssub.s32 %s1173_s30, %s1249_s11  ;;  %p216_p0 = scmp.ne.s32.totalorder %s1169_s29, %s1165_s28 }
   0x6   : > { %p204_p1 = scmp.eq.s32.totalorder %s203_s13, 0  ;;  %p217_p2 = scmp.eq.s32.totalorder %s1245_s9, 1 }
   0x7   : > { %p222_p3 = scmp.ne.s32.totalorder %s1165_s28, %s1161_s27  ;;  %p223_p4 = scmp.eq.s32.totalorder %s953_s10, 1 }
   0x8   : > { %s1260_s14 = scalar_select %p204_p1, %s1169_s29, %s206_s12  }
   0x9   : > { %p1262_p5 = por %p217_p2, %p216_p0  ;;  %p1266_p6 = por %p223_p4, %p222_p3 }
   0xa   : > { %p956_p7 = scmp.ge.s32.totalorder %s1173_s30, 1  ;;  %p277_p8 = scmp.lt.s32.totalorder %s1173_s30, 3 }
   0xc   : > { %p278_p9 = pnand %p956_p7, %p277_p8 }
   0xd   : > { %p324_p10 = scmp.lt.s32.totalorder (!%p278_p9), %s1245_s9, 1  ;;  %s958_s13 = sshll.u32 (!%p278_p9), %s1245_s9, 2 }
   0xe   : > { %281 = sbr.rel (%p278_p9) target bundleno = 1125 (0x465), region = 52  ;;  %p318_p11 = scmp.lt.s32.totalorder (!%p278_p9), %s958_s13, 7 }
   0xf   : > { %s985_s25 = sshll.u32 (!%p278_p9), %s1245_s9, 7 }
  0x13   : > { %v339_v0 = vld [vmem:[%s1381_s2] sm:$0xff]  ;;  %vm341_vm0 = vcmask 130048   ;;  %s325_s19 = scalar_select %p324_p10, %s1245_s9, 1  ;;  %v340_v3 = vld [vmem:[%s1381_s2 + $0x8] sm:$0xff]  ;;  %v428_v4 = vld [vmem:[%s1382_s3 + $0x18] sm:$0xff]  ;;  %vm429_vm1 = vcmask 261120   ;;  %v543_v14 = vlaneseq }
  0x14   : > { %1022 = vmatprep.mubr.msk.f32.mxu1 %vm341_vm0, %v339_v0  ;;  %v427_v5 = vld [vmem:[%s1382_s3 + $0x10] sm:$0xff]  ;;  %v426_v6 = vld [vmem:[%s1382_s3 + $0x8] sm:$0xff]  ;;  %v425_v7 = vld [vmem:[%s1382_s3] sm:$0xff]  ;;  %v1175_v25 = vmov 0   ;;  %s1395_s13 = smov (!%p318_p11, %s958_s13), 7  ;;  %vm596_vm2 = vcmask 64512  }
  0x15   : > { %s989_s20 = sshll.u32 %s325_s19, 4  ;;  %v544_v15 = vshrl.u32 %v543_v14, 7  ;;  %v595_v16 = vld [vmem:[%s1384_s5] sm:$0xff]  ;;  %1111 = vset.pattern.permute.xlu1 %v1175_v25  ;;  %v727_v27 = vld [vmem:[%s1383_s4 + $0x8] sm:$0xff]  ;;  %s988_s17 = sshll.u32 %s1395_s13, 4  ;;  %v1176_v54 = vmov 0.0  }
  0x16   : > { %s328_s23 = scalar_lea.vmem %s1380_s1, %s989_s20  ;;  %v726_v28 = vld [vmem:[%s1383_s4] sm:$0xff]  ;;  %s322_s20 = scalar_lea.vmem %s1379_s0, %s988_s17  ;;  %1050 = vmatprep.subr.mxu0 %v1176_v54  ;;  %vm1177_vm3 = vmmov 0   ;;  %vm866_vm4 = vcmask 523264  }
  0x17   : > { %v338_v1 = vld [vmem:[%s328_s23 + $0x8] sm:$0xff]  ;;  %v337_v2 = vld [vmem:[%s328_s23] sm:$0xff]  ;;  %v556_v17 = vsub.s32 1, %v544_v15  ;;  %v545_v18 = vsub.s32 0, %v544_v15  ;;  %v567_v22 = vsub.s32 2, %v544_v15  ;;  %v578_v24 = vsub.s32 3, %v544_v15  ;;  %1066 = vmatprep.mubr.msk.f32.mxu0 %vm1177_vm3, %v1176_v54  ;;  %s1344_s17 = scalar_lea.hbm %s1387_s8, %s985_s25 }
  0x18   : > { %1018 = vmatprep.subr.mxu1 %v338_v1  ;;  %v763_v29 = vld [vmem:[%s1386_s7] sm:$0xff]  ;;  %v1314_v33 = vld [vmem:[%s322_s20 + $0x8] sm:$0xff]  ;;  %v331_v35 = vld [vmem:[%s322_s20 + $0x10] sm:$0xff]  ;;  %s314_s23 = sand.u32 1, %s1165_s28   ;;  %s1178_s9 = smov [#allocation2]  }
  0x19   : > { %1019 = vmatpush3.msra.mxu1 %v338_v1  ;;  %v1311_v30 = vld [vmem:[%s322_s20] sm:$0xff]  ;;  %v332_v39 = vld [vmem:[%s322_s20 + $0x18] sm:$0xff]  ;;  %v334_v45 = vld [vmem:[%s322_s20 + $0x28] sm:$0xff]  ;;  %s957_s24 = sshll.u32 %s314_s23, 3  ;;  %s869_s18 = scalar_lea.sflag [#allocation3], %s314_s23 }
  0x1a   : > { %1020 = vmatprep.subr.mxu1 %v337_v2  ;;  %v333_v42 = vld [vmem:[%s322_s20 + $0x20] sm:$0xff]  ;;  %v335_v48 = vld [vmem:[%s322_s20 + $0x30] sm:$0xff]  ;;  %v336_v51 = vld [vmem:[%s322_s20 + $0x38] sm:$0xff]  ;;  %s316_s26 = scalar_lea.vmem [#allocation2], %s957_s24  ;;  %s1117_s20 = sshll.u32 %s1178_s9, 4  ;;  %s1118_s20 = int_to_ptr.vmem [resolvable:$false] %s1117_s20 }
  0x1b   : > { %1021 = vmatpush3.msra.mxu1 %v337_v2  ;;  %s882_s10 = sshll.u32 %s316_s26, 4  ;;  %s1119_s21 = scalar_lea.vmem %s1118_s20, 256  ;;  %s883_s10 = int_to_ptr.vmem [resolvable:$true] %s882_s10 }
  0x1c   : > { %1023 = vmatmul.mubr.msk.f32.vlgmr.msra.gmra.mxu1 %vm341_vm0, %v340_v3  ;;  %1025 = vmatprep.subr.mxu1 %v428_v4  ;;  %s1113_s19 = scalar_lea.vmem %s883_s10, 128  ;;  %p1120_p1 = scmp.lt.s32.totalorder %s883_s10, %s1118_s20 }
  0x1d   : > { %1026 = vmatpush3.msra.mxu1 %v428_v4  ;;  %p1114_p12 = scmp.ne.s32.totalorder %s883_s10, %s1113_s19  ;;  %p1121_p2 = scmp.lt.s32.totalorder %s1119_s21, %s1113_s19 }
  0x1e   : > { %1027 = vmatprep.subr.mxu1 %v427_v5 }
  0x1f   : > { %1028 = vmatpush3.msra.mxu1 %v427_v5  ;;  %p1115_p13 = pnand %p1114_p12, %p1262_p5  ;;  %p1122_p3 = por %p1121_p2, %p1120_p1 }
  0x20   : > { %1029 = vmatprep.subr.mxu1 %v426_v6 }
  0x21   : > { %1030 = vmatpush3.msra.mxu1 %v426_v6  ;;  %p1116_p0 = pneg %p1115_p13 }
  0x22   : > { %1031 = vmatprep.subr.mxu1 %v425_v7 }
  0x23   : > { %1032 = vmatpush3.msra.mxu1 %v425_v7  ;;  %p1123_p4 = pnand %p1122_p3, %p1116_p0 }
  0x24   : > { %1036 = vmatprep.subr.mxu1 %v595_v16 }
  0xdc   : > { %v1024_v8 = vpop.f32.mrf.mxu1 }
  0xdd   : > { %v424_v11 = vmul.f32 %v1024_v8, %v338_v1 }
  0xde   : > { %v414_v9 = vpop.f32.mrf.mxu1 }
  0xdf   : > { %v423_v10 = vmul.f32 %v414_v9, %v337_v2 }
  0xe1   : > { %1033 = vmatprep.mubr.msk.f32.mxu1 %vm429_vm1, %v423_v10 }
  0xe2   : > { %1034 = vmatmul.mubr.msk.f32.vlgmr.msra.gmra.mxu1 %vm429_vm1, %v424_v11 }
  0xe3   : > { %1037 = vmatpush3.msra.mxu1 %v595_v16 }
 0x1a2   : > { %v1035_v12 = vpop.f32.mrf.mxu1 }
 0x1a4   : > { %v502_v13 = vpop.f32.mrf.mxu1 }
 0x1a5   : > { %511 = vxpose.xlu0.b32.start [1/2] (short) (narrow) %v502_v13, 8 }
 0x1a9   : > { %512 = vxpose.xlu0.b32.end [2/2] (short) (narrow) %v1035_v12, 8 }
 0x1d2   : > { %1112 = vset.pattern.permute.xlu0 %v1175_v25  ;;  %v762_v25 = vld [vmem:[%s1385_s6] sm:$0xff] }
 0x221   : > { %v527_v19 = vpop.trf.xlu0 }
 0x222   : > { %v557_v20 = vrot.slane %v527_v19, %v556_v17  ;;  %v546_v21 = vrot.slane %v527_v19, %v545_v18  ;;  %v568_v23 = vrot.slane %v527_v19, %v567_v22  ;;  %v579_v26 = vrot.slane %v527_v19, %v578_v24 }
 0x224   : > { %559 = vbcast.lane.b32.xlu0 %v557_v20, 256  ;;  %548 = vbcast.lane.b32.xlu1 %v546_v21, 256 }
 0x228   : > { %552 = vbcast.lane.b32.xlu1 %v546_v21, 264 }
 0x22c   : > { %563 = vbcast.lane.b32.xlu1 %v557_v20, 264 }
 0x230   : > { %570 = vbcast.lane.b32.xlu1 %v568_v23, 256 }
 0x234   : > { %574 = vbcast.lane.b32.xlu1 %v568_v23, 264 }
 0x238   : > { %581 = vbcast.lane.b32.xlu1 %v579_v26, 256 }
 0x23c   : > { %585 = vbcast.lane.b32.xlu1 %v579_v26, 264 }
 0x240   : > { %735 = vperm.xlu1 %1111, %v727_v27  }
 0x244   : > { %730 = vperm.xlu1 %1111, %v726_v28  }
 0x248   : > { %766 = vperm.xlu1 %1111, %v763_v29  }
 0x296   : > { %v549_v31 = vpop.permute.xlu1 %548  ;;  %v560_v34 = vpop.permute.xlu0 %559 }
 0x297   : > { %v587_v32 = vmul.f32 %v549_v31, %v1311_v30  ;;  %v589_v38 = vmul.f32 %v560_v34, %v331_v35 }
 0x299   : > { %1038 = vmatprep.mubr.msk.f32.mxu1 %vm596_vm2, %v587_v32 }
 0x29a   : > { %v553_v36 = vpop.permute.xlu1 %552 }
 0x29b   : > { %v588_v37 = vmul.f32 %v553_v36, %v1314_v33 }
 0x29d   : > { %1039 = vmatmul.mubr.msk.f32.vlgmr.msra.gmra.mxu1 %vm596_vm2, %v588_v37 }
 0x29e   : > { %v564_v40 = vpop.permute.xlu1 %563  ;;  %1041 = vmatprep.mubr.msk.f32.mxu1 %vm596_vm2, %v589_v38 }
 0x29f   : > { %v590_v41 = vmul.f32 %v564_v40, %v332_v39 }
 0x2a1   : > { %1042 = vmatmul.mubr.msk.f32.gmra.mxu1 %vm596_vm2, %v590_v41 }
 0x2a2   : > { %v571_v43 = vpop.permute.xlu1 %570 }
 0x2a3   : > { %v591_v44 = vmul.f32 %v571_v43, %v333_v42 }
 0x2a5   : > { %1044 = vmatprep.mubr.msk.f32.mxu1 %vm596_vm2, %v591_v44 }
 0x2a6   : > { %v575_v46 = vpop.permute.xlu1 %574 }
 0x2a7   : > { %v592_v47 = vmul.f32 %v575_v46, %v334_v45 }
 0x2a9   : > { %1045 = vmatmul.mubr.msk.f32.gmra.mxu1 %vm596_vm2, %v592_v47 }
 0x2aa   : > { %v582_v49 = vpop.permute.xlu1 %581 }
 0x2ab   : > { %v593_v50 = vmul.f32 %v582_v49, %v335_v48 }
 0x2ad   : > { %1047 = vmatprep.mubr.msk.f32.mxu1 %vm596_vm2, %v593_v50 }
 0x2ae   : > { %v586_v52 = vpop.permute.xlu1 %585 }
 0x2af   : > { %v594_v53 = vmul.f32 %v586_v52, %v336_v51 }
 0x2b1   : > { %1048 = vmatmul.mubr.msk.f32.gmra.mxu1 %vm596_vm2, %v594_v53 }
 0x2bb   : > { %v736_v59 = vpop.permute.xlu1 %735 }
 0x2bc   : > { %v745_v61 = vmul.f32 %v736_v59, %v336_v51  ;;  %v743_v4 = vmul.f32 %v736_v59, %v334_v45  ;;  %v741_v10 = vmul.f32 %v736_v59, %v332_v39  ;;  %v739_v16 = vmul.f32 %v736_v59, %v1314_v33 }
 0x2bf   : > { %v731_v63 = vpop.permute.xlu1 %730 }
 0x2c0   : > { %v744_v2 = vmul.f32 %v731_v63, %v335_v48  ;;  %v742_v8 = vmul.f32 %v731_v63, %v333_v42  ;;  %v740_v14 = vmul.f32 %v731_v63, %v331_v35  ;;  %v738_v20 = vmul.f32 %v731_v63, %v1311_v30 }
 0x2c3   : > { %v767_v26 = vpop.permute.xlu1 %766 }
 0x35d   : > { %v1040_v55 = vpop.f32.mrf.mxu1 }
 0x35e   : > { %v747_v19 = vadd.f32 %v1040_v55, %v739_v16 }
 0x35f   : > { %v687_v56 = vpop.f32.mrf.mxu1 }
 0x360   : > { %v755_v22 = vmax.f32 %v747_v19, 0.0  ;;  %v746_v23 = vadd.f32 %v738_v20, %v687_v56 }
 0x361   : > { %v1043_v57 = vpop.f32.mrf.mxu1 }
 0x362   : > { %v749_v13 = vadd.f32 %v1043_v57, %v741_v10  ;;  %v754_v24 = vmax.f32 %v746_v23, 0.0 }
 0x363   : > { %v697_v58 = vpop.f32.mrf.mxu1 }
 0x364   : > { %v757_v17 = vmax.f32 %v749_v13, 0.0  ;;  %v748_v18 = vadd.f32 %v740_v14, %v697_v58 }
 0x366   : > { %v756_v21 = vmax.f32 %v748_v18, 0.0 }
 0x369   : > { %v1046_v60 = vpop.f32.mrf.mxu1 }
 0x36a   : > { %v751_v7 = vadd.f32 %v1046_v60, %v743_v4 }
 0x36b   : > { %v707_v62 = vpop.f32.mrf.mxu1 }
 0x36c   : > { %v759_v11 = vmax.f32 %v751_v7, 0.0  ;;  %v750_v12 = vadd.f32 %v742_v8, %v707_v62 }
 0x36e   : > { %v758_v15 = vmax.f32 %v750_v12, 0.0 }
 0x371   : > { %v1049_v0 = vpop.f32.mrf.mxu1 }
 0x372   : > { %v753_v1 = vadd.f32 %v1049_v0, %v745_v61 }
 0x373   : > { %v717_v3 = vpop.f32.mrf.mxu1 }
 0x374   : > { %v761_v5 = vmax.f32 %v753_v1, 0.0  ;;  %v752_v6 = vadd.f32 %v744_v2, %v717_v3 }
 0x376   : > { %1051 = vmatpush3.xpose.msk.msra.mxu0 %vm596_vm2, %v761_v5  ;;  %v760_v9 = vmax.f32 %v752_v6, 0.0 }
 0x377   : > { %1052 = vmatprep.subr.mxu0 %v1176_v54 }
 0x37a   : > { %1053 = vmatpush3.xpose.msk.msra.mxu0 %vm596_vm2, %v760_v9 }
 0x37b   : > { %1054 = vmatprep.subr.mxu0 %v1176_v54 }
 0x37e   : > { %1055 = vmatpush3.xpose.msk.msra.mxu0 %vm596_vm2, %v759_v11 }
 0x37f   : > { %1056 = vmatprep.subr.mxu0 %v1176_v54 }
 0x382   : > { %1057 = vmatpush3.xpose.msk.msra.mxu0 %vm596_vm2, %v758_v15 }
 0x383   : > { %1058 = vmatprep.subr.mxu0 %v1176_v54 }
 0x386   : > { %1059 = vmatpush3.xpose.msk.msra.mxu0 %vm596_vm2, %v757_v17 }
 0x387   : > { %1060 = vmatprep.subr.mxu0 %v1176_v54 }
 0x38a   : > { %1061 = vmatpush3.xpose.msk.msra.mxu0 %vm596_vm2, %v756_v21 }
 0x38b   : > { %1062 = vmatprep.subr.mxu0 %v1176_v54 }
 0x38e   : > { %1063 = vmatpush3.xpose.msk.msra.mxu0 %vm596_vm2, %v755_v22 }
 0x38f   : > { %1064 = vmatprep.subr.mxu0 %v1176_v54 }
 0x392   : > { %1065 = vmatpush3.xpose.msk.msra.mxu0 %vm596_vm2, %v754_v24 }
 0x395   : > { %1067 = vmatmul.mubr.msk.f32.vlgmr.msra.gmra.mxu0 %vm596_vm2, %v762_v25 }
 0x455   : > { %v862_v27 = vpop.f32.mrf.mxu0 }
 0x456   : > { %v863_v28 = vadd.f32 %v862_v27, %v767_v26 }
 0x457   : > { %v1068_v29 = vpop.f32.mrf.mxu0 }
 0x458   : > { %867 = vst.msk [vmem:[%s316_s26] sm:$0xff] %vm866_vm4, %v863_v28 }
 0x459   : > { %1126 = shalt.err (!%p1123_p4)
}
 0x45a   : > { %s1127_s22 = scalar_lea.hbm %s1344_s17, 128  ;;  %s1131_s25 = scalar_lea.hbm %s1387_s8, 256 }
 0x45b   : > { %p1128_p7 = scmp.ne.s32.totalorder %s1344_s17, %s1127_s22  ;;  %p1132_p10 = scmp.lt.s32.totalorder %s1344_s17, %s1387_s8 }
 0x45c   : > { %p1133_p11 = scmp.lt.s32.totalorder %s1131_s25, %s1127_s22 }
 0x45d   : > { %p1129_p8 = pnand %p1128_p7, %p1262_p5 }
 0x45e   : > { %p1134_p12 = por %p1133_p11, %p1132_p10 }
 0x45f   : > { %p1130_p9 = pneg %p1129_p8 }
 0x461   : > { %p1135_p13 = pnand %p1134_p12, %p1130_p9 }
 0x463   : > { %1138 = shalt.err (!%p1135_p13)
}
 0x464   : > { %1069 = dma.vmem_to_hbm [thread:$0]  (%p1262_p5), %s883_s10, 128, %s1344_s17, %s869_s18  }
 0x465 PF: > { %p1075_p0 = scmp.ge.s32.totalorder %s1173_s30, 2  ;;  %s894_s13 = sand.u32 1, %s1161_s27  }
 0x466   : > { %s895_s19 = scalar_lea.sflag [#allocation3], %s894_s13 }
 0x467   : > { %p1072_p1 = pnand %p1075_p0, %p1266_p6 }
 0x469   : > { %p1073_p2 = pneg %p1072_p1 }
 0x46b   : > { %1156 = dma.done.wait (%p1073_p2), %s895_s19, 128  }
 0x46c   : > { %1158 = vsyncadd (%p1073_p2), %s895_s19, 4294967168  ;;  %p18_p3 = scmp.ge.s32.totalorder %s1249_s11, 4   ;;  %s1390_s27 = smov %s1165_s28 }
 0x46d   : > { %s1391_s28 = smov %s1169_s29  ;;  %s1392_s29 = smov %s1260_s14 }
 0x46e   : > { %s1393_s30 = smov %s1249_s11  ;;  %20 = sbr.rel (!%p18_p3) target bundleno = 3 (0x3), region = 90 }
 0x473   :  { %900 = vsyncpa [#allocation3], 1 }
 0x474   :  { %902 = vsyncpa [#allocation3 + $0x1], 1 }

</bundles_post_ra>
